<compile_context>
chip_gen: v5e
topology: v5e:2x2
jax: 0.10.0
libtpu: 0.0.40
codegen_flags: <defaults>
</compile_context>

<pallas_src>
import jax
import jax.numpy as jnp
from jax.experimental import pallas as pl
from jax.experimental.pallas import tpu as pltpu


_TARGET_BLOCK_BYTES = 4 * 1024 * 1024   # per VMEM buffer (in + out, double-buffered)
_VMEM_LIMIT_BYTES = 32 * 1024 * 1024    # safe on v5e (16 MiB default), v6e, v7x (64 MiB phys)


def _pick_c_tile(C, bytes_per_channel):
    """Largest divisor of C whose per-step block stays under the VMEM target."""
    c_tile = 1
    for cand in range(1, C + 1):
        if C % cand == 0 and cand * bytes_per_channel <= _TARGET_BLOCK_BYTES:
            c_tile = cand
    return c_tile


def _copy_kernel(x_ref, o_ref):
    # Pure copy: the (c, j) -> c*r + j channel permutation and the width
    # slicing are done entirely by the BlockSpec index_maps / DMA.
    o_ref[...] = x_ref[...]


def _transpose_kernel(x_ref, o_ref):
    # (1, C_TILE, H, r, out_w) -> (1, C_TILE, r, H, out_w)
    o_ref[...] = jnp.transpose(x_ref[...], (0, 1, 3, 2, 4))


def unshuffle_layer(x, ratios: int):
    """Pallas implementation of UnShuffle_Layer.forward.

    x: (B, C, H, W) array.  Returns (B, C*ratios, H, W // ratios).
    """
    B, C, H, W = x.shape
    r = int(ratios)
    assert W % r == 0, "width must be divisible by ratios"
    out_w = W // r
    itemsize = jnp.dtype(x.dtype).itemsize

    if out_w % 128 == 0 or r == 1:
        # ---- Fast path: permutation via index_maps, kernel is a plain copy. ----
        c_tile = _pick_c_tile(C, H * out_w * itemsize)
        grid = (B, C // c_tile, r)  # j innermost -> contiguous HBM walk on both sides
        out5 = pl.pallas_call(
            _copy_kernel,
            out_shape=jax.ShapeDtypeStruct((B, C, r, H, out_w), x.dtype),
            grid=grid,
            in_specs=[
                # slice j-th width chunk of c_tile channels straight from 4-D x
                pl.BlockSpec((1, c_tile, H, out_w), lambda b, ct, j: (b, ct, 0, j)),
            ],
            out_specs=pl.BlockSpec(
                # r-dim squeezed: kernel sees (1, c_tile, H, out_w) on both refs
                (1, c_tile, None, H, out_w), lambda b, ct, j: (b, ct, j, 0, 0)
            ),
            compiler_params=pltpu.CompilerParams(
                dimension_semantics=("parallel", "parallel", "parallel"),
                vmem_limit_bytes=_VMEM_LIMIT_BYTES,
            ),
        )(x)
    else:
        # ---- Safe path: last two block dims equal full array dims (always legal);
        #      channel-fused blocks amortize per-step pipeline overhead. ----
        # TODO(synk): when out_w is not a multiple of 128 the in-kernel swap keeps
        # a narrow lane width; lane-dense repacking would need a custom DMA layout.
        c_tile = _pick_c_tile(C, H * W * itemsize)
        x5 = x.reshape(B, C, H, r, out_w)  # dim-split view, metadata only
        grid = (B, C // c_tile)
        out5 = pl.pallas_call(
            _transpose_kernel,
            out_shape=jax.ShapeDtypeStruct((B, C, r, H, out_w), x.dtype),
            grid=grid,
            in_specs=[
                pl.BlockSpec((1, c_tile, H, r, out_w), lambda b, ct: (b, ct, 0, 0, 0)),
            ],
            out_specs=pl.BlockSpec(
                (1, c_tile, r, H, out_w), lambda b, ct: (b, ct, 0, 0, 0)
            ),
            compiler_params=pltpu.CompilerParams(
                dimension_semantics=("parallel", "parallel"),
                vmem_limit_bytes=_VMEM_LIMIT_BYTES,
            ),
        )(x5)

    # (B, C, r, H, out_w) -> (B, C*r, H, out_w): merges adjacent dims, metadata only.
    return out5.reshape(B, C * r, H, out_w)


def _reference(x, ratios: int):
    """Pure-JAX reference mirroring the PyTorch code exactly."""
    B, C, H, W = x.shape
    out_w = W // ratios
    v = x.reshape(B, C, H, ratios, out_w)
    v = jnp.transpose(v, (0, 1, 3, 2, 4))
    return v.reshape(B, C * ratios, H, out_w)


if __name__ == "__main__":
    key = jax.random.PRNGKey(0)
    k1, k2 = jax.random.split(key)

    # Case 1: out_w = 128 -> lane-aligned fast path (index-map copy, no transpose).
    B, C, H, W, r = 2, 4, 16, 256, 2
    x1 = jax.random.normal(k1, (B, C, H, W), dtype=jnp.float32)
    out1 = jax.block_until_ready(unshuffle_layer(x1, r))
    ref1 = _reference(x1, r)
    assert out1.shape == (B, C * r, H, W // r), out1.shape
    assert out1.dtype == x1.dtype
    assert jnp.array_equal(out1, ref1), "fast path mismatch vs reference"

    # Case 2: out_w = 8 -> safe fallback path (in-kernel H<->r swap, fused channels).
    B, C, H, W, r = 2, 4, 16, 16, 2
    x2 = jax.random.normal(k2, (B, C, H, W), dtype=jnp.float32)
    out2 = jax.block_until_ready(unshuffle_layer(x2, r))
    ref2 = _reference(x2, r)
    assert out2.shape == (B, C * r, H, W // r), out2.shape
    assert out2.dtype == x2.dtype
    assert jnp.array_equal(out2, ref2), "fallback path mismatch vs reference"

    print("KERNEL_OK")
</pallas_src>

<mosaic_0001>
module attributes {stable_mosaic.version = 11 : i64} {
  func.func @_copy_kernel(%arg0: i32, %arg1: i32, %arg2: i32, %arg3: memref<1x4x16x128xf32, #tpu.memory_space<vmem>>, %arg4: memref<1x4x1x16x128xf32, #tpu.memory_space<vmem>>) attributes {dimension_semantics = [#tpu.dimension_semantics<parallel>, #tpu.dimension_semantics<parallel>, #tpu.dimension_semantics<parallel>], iteration_bounds = array<i64: 2, 1, 2>, scalar_prefetch = 0 : i64, scratch_operands = 0 : i64, tpu.core_type = #tpu.core_type<tc>, window_params = [{transform_indices = @transform_0, window_bounds = array<i64: 1, 4, 16, 128>}, {transform_indices = @transform_1, window_bounds = array<i64: 1, 4, 1, 16, 128>}]} {
    %c0 = arith.constant 0 : index
    %c0_0 = arith.constant 0 : index
    %c0_1 = arith.constant 0 : index
    %c0_2 = arith.constant 0 : index
    %0 = vector.load %arg3[%c0, %c0_0, %c0_1, %c0_2] : memref<1x4x16x128xf32, #tpu.memory_space<vmem>>, vector<1x4x16x128xf32>
    %c0_3 = arith.constant 0 : index
    %c0_4 = arith.constant 0 : index
    %c0_5 = arith.constant 0 : index
    %c0_6 = arith.constant 0 : index
    %c0_7 = arith.constant 0 : index
    %1 = vector.load %arg4[%c0_3, %c0_4, %c0_5, %c0_6, %c0_7] : memref<1x4x1x16x128xf32, #tpu.memory_space<vmem>>, vector<1x4x1x16x128xf32>
    %2 = vector.shape_cast %1 : vector<1x4x1x16x128xf32> to vector<1x4x16x128xf32>
    %3 = vector.shape_cast %0 : vector<1x4x16x128xf32> to vector<1x4x1x16x128xf32>
    tpu.vector_store %arg4[%c0_3, %c0_4, %c0_5, %c0_6, %c0_7], %3 {strides = array<i32>} : memref<1x4x1x16x128xf32, #tpu.memory_space<vmem>>, vector<1x4x1x16x128xf32>,
    return
  }
  func.func @transform_0(%arg0: i32, %arg1: i32, %arg2: i32) -> (i32, i32, i32, i32) {
    %c0_i32 = arith.constant 0 : i32
    %c0_i32_0 = arith.constant 0 : i32
    return %arg0, %arg1, %c0_i32, %arg2 : i32, i32, i32, i32
  }
  func.func @transform_1(%arg0: i32, %arg1: i32, %arg2: i32) -> (i32, i32, i32, i32, i32) {
    %c0_i32 = arith.constant 0 : i32
    %c0_i32_0 = arith.constant 0 : i32
    %c0_i32_1 = arith.constant 0 : i32
    return %arg0, %arg1, %arg2, %c0_i32, %c0_i32_0 : i32, i32, i32, i32, i32
  }
}

</mosaic_0001>

<bundles_post_ra>
// kernel: tpu_custom_call.1
= control target key start
LH: loop header
LB: loop body
LE: loop exit
PB: predicated region body
PF: predicated region fallthrough
CT: control target
= control target key end

     0   :  { %6 = vsyncpa [#allocation3], 0  ;;  %s704_s0 = inlined_call_operand.hbm [shape: f32[2,4,16,256], index: 0, kind: input, shape index: {}]   ;;  %s705_s1 = inlined_call_operand.hbm [shape: f32[2,4,2,16,128], index: 1, kind: output, shape index: {}]  }
   0x1   :  { %8 = vsyncpa [#allocation3 + $0x1], 0 }
   0x2   :  { %9 = vsyncpa [#allocation4], 0 }
   0x3   :  { %11 = vsyncpa [#allocation4 + $0x1], 0  ;;  %s558_s6 = smov 0   ;;  %s560_s7 = smov 0  }
   0x4   :  { %s562_s8 = smov 0   ;;  %s564_s9 = smov 0  }
   0x5   :  { %s566_s10 = smov 0   ;;  %s568_s11 = smov 0  }
   0x6   :  { %s570_s12 = smov 0   ;;  %s572_s13 = smov 0  }
   0x7 LB: > { %s326_s14 = sadd.s32 4294967295, %s536_s13   ;;  %s327_s15 = sadd.s32 4294967294, %s536_s13   ;;  %s536_s13 = sphi %s572_s13, %s17_s13   ;;  %s532_s12 = sphi %s570_s12, %s719_s12   ;;  %s528_s11 = sphi %s568_s11, %s718_s11   ;;  %s524_s10 = sphi %s566_s10, %s717_s10   ;;  %s520_s9 = sphi %s564_s9, %s716_s9   ;;  %s516_s8 = sphi %s562_s8, %s715_s8   ;;  %s512_s7 = sphi %s560_s7, %s714_s7   ;;  %s508_s6 = sphi %s558_s6, %s713_s6  }
   0x8   : > { %s29_s16 = sadd.s32 1, %s528_s11  ;;  %s36_s17 = sadd.s32 1, %s532_s12 }
   0x9   : > { %p30_p0 = scmp.ge.s32.totalorder %s29_s16, 2  ;;  %s47_s18 = sadd.s32 1, %s516_s8 }
   0xa   : > { %p54_p1 = scmp.ne.s32.totalorder %s516_s8, %s512_s7  ;;  %p55_p2 = scmp.eq.s32.totalorder %s536_s13, 0 }
   0xb   : > { %s721_s16 = smov (%p30_p0, %s29_s16), 0  ;;  %s723_s17 = smov (!%p30_p0, %s36_s17), %s532_s12 }
   0xc   : > { %s43_s19 = ssub.s32 %s528_s11, %s721_s16  ;;  %p611_p3 = por %p55_p2, %p54_p1 }
   0xd   : > { %p38_p4 = scmp.ge.s32.totalorder %s723_s17, 2  ;;  %p60_p5 = scmp.ne.s32.totalorder %s512_s7, %s508_s6 }
   0xe   : > { %p61_p6 = scmp.eq.s32.totalorder %s326_s14, 0  ;;  %p88_p7 = scmp.eq.s32.totalorder %s326_s14, 3 }
   0xf   : > { %s725_s17 = smov (%p38_p4, %s723_s17), 0  ;;  %p94_p10 = scmp.eq.s32.totalorder %s327_s15, 3 }
  0x10   : > { %708 = sst [smem:[#allocation10_spill]] %s725_s17  ;;  %p619_p8 = por %p61_p6, %p60_p5 }
  0x11   : > { %p623_p9 = por %p88_p7, %p54_p1  ;;  %s40_s23 = ssub.s32 %s532_s12, %s725_s17 }
  0x12   : > { %s44_s24 = sor.u32 %s43_s19, %s40_s23  ;;  %p629_p12 = por %p94_p10, %p60_p5 }
  0x13   : > { %p45_p11 = scmp.eq.s32.totalorder %s44_s24, 0  ;;  %p360_p13 = scmp.lt.s32.totalorder %s536_s13, 4 }
  0x14   : > { %s114_s26 = sand.u32 1, %s516_s8   ;;  %s331_s29 = sshll.u32 %s532_s12, 4 }
  0x15   : > { %s636_s27 = scalar_select %p45_p11, %s516_s8, %s47_s18  }
  0x16   : > { %s330_s28 = sshll.u32 %s114_s26, 6  ;;  %s125_s30 = sadd.s32 %s528_s11, %s331_s29 }
  0x17   : > { %s118_s2 = scalar_lea.vmem [#allocation2], %s330_s28  ;;  %s332_s4 = sshll.u32 %s125_s30, 3 }
  0x18   : > { %s130_s3 = sshll.u32 %s118_s2, 4  ;;  %s127_s15 = scalar_lea.hbm %s704_s0, %s332_s4  ;;  %s131_s3 = int_to_ptr.vmem [resolvable:$true] %s130_s3 }
  0x19   : > { %p353_p0 = pnand %p360_p13, %p611_p3  ;;  %s128_s19 = sshll.u32 %s127_s15, 4  ;;  %s129_s19 = int_to_ptr.hbm [resolvable:$true] %s128_s19 }
  0x1a   : > { %s115_s23 = scalar_lea.sflag [#allocation3], %s114_s26  ;;  %s538_s18 = smov 256  }
  0x1b   : > { %s539_s24 = smov 128   ;;  %s540_s17 = smov 8  }
  0x1c   : > { %355 = dma.hbm_to_vmem [thread:$0]  (!%p353_p0), %s129_s19, 1024, %s131_s3, %s115_s23, %s538_s18, %s539_s24, %s540_s17  }
  0x1d   : > { %p333_p1 = scmp.ge.s32.totalorder %s536_s13, 1  ;;  %p138_p2 = scmp.lt.s32.totalorder %s536_s13, 5 }
  0x1f   : > { %p139_p4 = pnand %p333_p1, %p138_p2 }
  0x20   : > { %s648_s28 = sand.u32 (!%p139_p4), 1, %s512_s7  }
  0x21   : > { %142 = sbr.rel (%p139_p4) target bundleno = 59 (0x3b), region = 24  ;;  %s334_s29 = sshll.u32 (!%p139_p4), %s648_s28, 6 }
  0x22   : > { %s145_s20 = scalar_lea.sflag (!%p139_p4), [#allocation3], %s648_s28  ;;  %s148_s30 = scalar_lea.vmem (!%p139_p4), [#allocation2], %s334_s29 }
  0x26   : > { %499 = dma.done.wait (%p619_p8), %s145_s20, 1024  }
  0x27   : > { %501 = vsyncadd (%p619_p8), %s145_s20, 4294966272  ;;  %v170_v0 = vld [vmem:[%s148_s30] sm:$0xff]  ;;  %v171_v1 = vld [vmem:[%s148_s30 + $0x8] sm:$0xff]  ;;  %s167_s17 = scalar_lea.vmem [#allocation5], %s334_s29  ;;  %s187_s21 = scalar_lea.sflag [#allocation4], %s648_s28 }
  0x28   : > { %v172_v2 = vld [vmem:[%s148_s30 + $0x10] sm:$0xff]  ;;  %178 = vst [vmem:[%s167_s17] sm:$0xff] %v170_v0  ;;  %v173_v3 = vld [vmem:[%s148_s30 + $0x18] sm:$0xff]  ;;  %v174_v4 = vld [vmem:[%s148_s30 + $0x20] sm:$0xff] }
  0x29   : > { %179 = vst [vmem:[%s167_s17 + $0x8] sm:$0xff] %v171_v1  ;;  %v175_v5 = vld [vmem:[%s148_s30 + $0x28] sm:$0xff]  ;;  %v176_v6 = vld [vmem:[%s148_s30 + $0x30] sm:$0xff]  ;;  %v177_v7 = vld [vmem:[%s148_s30 + $0x38] sm:$0xff] }
  0x2a   : > { %180 = vst [vmem:[%s167_s17 + $0x10] sm:$0xff] %v172_v2 }
  0x2b   : > { %181 = vst [vmem:[%s167_s17 + $0x18] sm:$0xff] %v173_v3 }
  0x2c   : > { %182 = vst [vmem:[%s167_s17 + $0x20] sm:$0xff] %v174_v4 }
  0x2d   : > { %183 = vst [vmem:[%s167_s17 + $0x28] sm:$0xff] %v175_v5 }
  0x2e   : > { %184 = vst [vmem:[%s167_s17 + $0x30] sm:$0xff] %v176_v6 }
  0x2f   : > { %185 = vst [vmem:[%s167_s17 + $0x38] sm:$0xff] %v177_v7 }
  0x30   : > { %s337_s26 = sshll.u32 %s520_s9, 1  ;;  %s338_s2 = sshll.u32 %s524_s10, 4 }
  0x31   : > { %s201_s3 = sadd.s32 %s338_s2, %s337_s26  ;;  %s214_s4 = sshll.u32 %s167_s17, 4  ;;  %s215_s4 = int_to_ptr.vmem [resolvable:$true] %s214_s4 }
  0x32   : > { %s339_s5 = sshll.u32 %s201_s3, 3  ;;  %s541_s18 = smov 256  }
  0x33   : > { %s203_s19 = scalar_lea.hbm %s705_s1, %s339_s5  ;;  %344 = sst [smem:[#allocation7]] (%p623_p9), %s541_s18 }
  0x34   : > { %s216_s23 = sshll.u32 %s203_s19, 4  ;;  %s542_s24 = smov 512   ;;  %s217_s23 = int_to_ptr.hbm [resolvable:$true] %s216_s23 }
  0x35   : > { %345 = sst [smem:[#allocation7 + $0x1]] (%p623_p9), %s542_s24  ;;  %s543_s9 = smov 2  }
  0x36   : > { %346 = sst [smem:[#allocation7 + $0x2]] (%p623_p9), %s543_s9  ;;  %s544_s10 = smov 128  }
  0x37   : > { %347 = sst [smem:[#allocation7 + $0x3]] (%p623_p9), %s544_s10  ;;  %s545_s28 = smov 8  }
  0x38   : > { %348 = sst [smem:[#allocation7 + $0x4]] (%p623_p9), %s544_s10  ;;  %s546_s29 = smov [#allocation6]  }
  0x39   : > { %349 = sst [smem:[#allocation7 + $0x5]] (%p623_p9), %s545_s28  ;;  %s547_s20 = smov 0  }
  0x3a   : > { %350 = dma.general (%p623_p9), %s215_s4, 1024, %s217_s23, %s187_s21, %s546_s29, [#allocation7], %s547_s20, 0  }
  0x3b PF: > { %p361_p3 = scmp.ge.s32.totalorder %s536_s13, 2  ;;  %s244_s30 = sand.u32 1, %s508_s6  }
  0x3c   : > { %s245_s17 = scalar_lea.sflag [#allocation4], %s244_s30 }
  0x3d   : > { %p357_p5 = pnand %p361_p3, %p629_p12 }
  0x3f   : > { %p358_p6 = pneg %p357_p5 }
  0x41   : > { %503 = dma.done.wait (%p358_p6), %s245_s17, 1024  }
  0x42   : > { %505 = vsyncadd (%p358_p6), %s245_s17, 4294966272  ;;  %s17_s13 = sadd.s32 1, %s536_s13   ;;  %s712_s22 = sld [smem:[#allocation10_spill]] }
  0x43   : > { %p14_p7 = scmp.ge.s32.totalorder %s17_s13, 6   ;;  %s713_s6 = smov %s512_s7 }
  0x44   : > { %s714_s7 = smov %s516_s8  ;;  %s715_s8 = smov %s636_s27 }
  0x45   : > { %s716_s9 = smov %s528_s11  ;;  %s717_s10 = smov %s532_s12 }
  0x46   : > { %s718_s11 = smov %s721_s16  ;;  %16 = sbr.rel (!%p14_p7) target bundleno = 7 (0x7), region = 74 }
  0x48   : > { %s719_s12 = smov %s712_s22 }
  0x4b   :  { %251 = vsyncpa [#allocation3], 1 }
  0x4c   :  { %253 = vsyncpa [#allocation3 + $0x1], 1 }
  0x4d   :  { %254 = vsyncpa [#allocation4], 1 }
  0x4e   :  { %256 = vsyncpa [#allocation4 + $0x1], 1 }

</bundles_post_ra>
